<compile_context>
chip_gen: v7x
topology: tpu7x:2x2x1
jax: 0.10.0
libtpu: 0.0.40
codegen_flags: <defaults>
</compile_context>

<pallas_src>
import functools

import jax
import jax.numpy as jnp
from jax.experimental import pallas as pl
from jax.experimental.pallas import tpu as pltpu

EPS = 1e-5


def _is_pow2(n):
    return n > 0 and (n & (n - 1)) == 0


def fused_block2_kernel(x_ref, w_ref, p_ref, out_ref, *, H, W):
    """conv3x3 -> BN -> ReLU -> conv3x3 -> BN -> +identity, fully resident in VMEM/vregs.

    x_ref:   (C, M)       input, M = N*H*W flattened on the lane axis (row-major n, h, w)
    w_ref:   (2, C, 9*C)  stacked transposed im2col conv weights (stage 1, stage 2)
    p_ref:   (C, 4)       packed BN affine params, columns = [g1, be1, g2, be2]
    out_ref: (C, M)       output (lane-dense store: M is a multiple of 128 at this shape)
    """
    C, M = x_ref.shape
    x = x_ref[...]
    p = p_ref[...]

    # Edge masks for replicate padding, from a lane iota over the flattened (n, h, w) index.
    col = jax.lax.broadcasted_iota(jnp.int32, (C, M), 1)
    if _is_pow2(W) and _is_pow2(H):
        w_id = col & (W - 1)
        h_id = (col >> (W.bit_length() - 1)) & (H - 1)
    else:  # general path; the pow2 path avoids vector integer div/mod entirely
        w_id = col % W
        h_id = (col // W) % H
    at_w_first = w_id == 0
    at_w_last = w_id == (W - 1)
    at_h_first = h_id == 0
    at_h_last = h_id == (H - 1)

    def roll_m(v, k):
        # out[:, m] = v[:, (m - k) % M]  (exact jnp.roll semantics, static shift).
        # Wrapped-around values only land at edge positions, which the masks overwrite.
        # TODO(synk): swap for pltpu.roll (XLU-native lane rotate) after verifying direction.
        k = k % M
        if k == 0:
            return v
        return jnp.concatenate([v[:, M - k:], v[:, :M - k]], axis=1)

    def conv3x3(v, w_t):
        """v: (C, M) activations, w_t: (C, 9C) weights -> (C, M) f32. Bias dropped (BN cancels it)."""
        # W-direction taps with replicate clamping (shift along the flattened index by +-1).
        left = jnp.where(at_w_first, v, roll_m(v, 1))     # value at (h, w-1)
        right = jnp.where(at_w_last, v, roll_m(v, -1))    # value at (h, w+1)
        cols = (left, v, right)                           # dx = -1, 0, +1
        # H-direction taps (shift by +-W) applied to each W-clamped variant -> 9 taps, t = 3*i + j.
        up = lambda u: jnp.where(at_h_first, u, roll_m(u, W))     # value at (h-1, .)
        down = lambda u: jnp.where(at_h_last, u, roll_m(u, -W))   # value at (h+1, .)
        taps = [up(c) for c in cols] + list(cols) + [down(c) for c in cols]
        # im2col patches as a value (no scratch round-trip): (9C, M), M lane-dense.
        patches = jnp.concatenate(taps, axis=0)
        # One MXU matmul per stage: (C, 9C) @ (9C, M) -> (C, M).
        # TODO(synk): cast patches/w_t to bf16 at realistic C for v6e/v7x MXU throughput.
        return jnp.dot(w_t, patches, preferred_element_type=jnp.float32)

    def bn_affine(h, g, be):
        """Training-mode BatchNorm over M (biased, centered variance), affine folded into one FMA."""
        mean = jnp.mean(h, axis=1, keepdims=True)
        ctr = h - mean
        var = jnp.mean(ctr * ctr, axis=1, keepdims=True)
        scale = g * jax.lax.rsqrt(var + EPS)
        shift = be - mean * scale
        return h * scale + shift

    # Stage 1: conv -> BN -> ReLU.
    h = jnp.maximum(bn_affine(conv3x3(x, w_ref[0]), p[:, 0:1], p[:, 1:2]), 0.0)
    # Stage 2: conv -> BN -> residual add. `h` stays in the same (C, M) layout -- no reshape.
    y = bn_affine(conv3x3(h, w_ref[1]), p[:, 2:3], p[:, 3:4]) + x

    out_ref[...] = y.astype(out_ref.dtype)


def _vmem_spec():
    return pl.BlockSpec(memory_space=pltpu.MemorySpace.VMEM)


@jax.jit
def block_type2_forward(x_nchw, params):
    """BlockType2 forward (training-mode BN semantics). NCHW in / NCHW out."""
    N, C, H, W = x_nchw.shape
    M = N * H * W
    # NCHW -> (C, M) with M enumerating (n, h, w) row-major; channels on sublanes, M on lanes.
    # TODO(synk): at real sizes keep the surrounding model in this layout to drop these transposes.
    x_cm = jnp.transpose(x_nchw, (1, 0, 2, 3)).reshape(C, M).astype(jnp.float32)
    # Conv weights (9, Cin, Cout) -> transposed matmul form (Cout, 9*Cin); both stages stacked.
    w_pk = jnp.stack([params["w1"].reshape(9 * C, C).T,
                      params["w2"].reshape(9 * C, C).T]).astype(jnp.float32)          # (2, C, 9C)
    # Packed BN affine params (C, 4) = [g1, be1, g2, be2]. Conv biases intentionally not passed:
    # training-mode BN's batch-mean subtraction cancels them (reference keeps them and matches).
    p_pk = jnp.stack([params["g1"], params["be1"], params["g2"], params["be2"]],
                     axis=1).astype(jnp.float32)                                      # (C, 4)

    y_cm = pl.pallas_call(
        functools.partial(fused_block2_kernel, H=H, W=W),
        out_shape=jax.ShapeDtypeStruct((C, M), jnp.float32),
        in_specs=[_vmem_spec(), _vmem_spec(), _vmem_spec()],
        out_specs=_vmem_spec(),
        compiler_params=pltpu.CompilerParams(vmem_limit_bytes=32 * 1024 * 1024),
    )(x_cm, w_pk, p_pk)
    return jnp.transpose(y_cm.reshape(C, N, H, W), (1, 0, 2, 3))


# ----------------------------- pure-JAX reference (PyTorch semantics) -----------------------------
def _conv3x3_replicate_ref(x_nhwc, w9, b):
    """Conv2d(k=3, stride=1, padding=1, padding_mode='replicate', bias=True)."""
    xp = jnp.pad(x_nhwc, ((0, 0), (1, 1), (1, 1), (0, 0)), mode="edge")
    N, Hp, Wp, _ = xp.shape
    H, W = Hp - 2, Wp - 2
    out = jnp.zeros((N, H, W, w9.shape[-1]), jnp.float32)
    for t in range(9):
        i, j = t // 3, t % 3
        out = out + jnp.einsum("nhwc,co->nhwo", xp[:, i:i + H, j:j + W, :], w9[t])
    return out + b


def _bn_train_ref(h, g, be):
    mean = jnp.mean(h, axis=(0, 1, 2), keepdims=True)
    var = jnp.mean(jnp.square(h - mean), axis=(0, 1, 2), keepdims=True)
    return (h - mean) * jax.lax.rsqrt(var + EPS) * g + be


def block_type2_reference(x_nchw, params):
    x = jnp.transpose(x_nchw, (0, 2, 3, 1))
    h = _bn_train_ref(_conv3x3_replicate_ref(x, params["w1"], params["b1"]),
                      params["g1"], params["be1"])
    h = jnp.maximum(h, 0.0)
    y = _bn_train_ref(_conv3x3_replicate_ref(h, params["w2"], params["b2"]),
                      params["g2"], params["be2"])
    y = y + x
    return jnp.transpose(y, (0, 3, 1, 2))


# ---------------------------------------------- main ----------------------------------------------
if __name__ == "__main__":
    # BlockType2(inplanes=4, planes=4): the residual add requires inplanes == planes.
    N, C, H, W = 2, 4, 16, 16
    key = jax.random.PRNGKey(0)
    k = jax.random.split(key, 8)

    # PyTorch-layout conv weights (Cout, Cin, 3, 3), deterministic random init.
    w1_pt = jax.random.normal(k[0], (C, C, 3, 3), jnp.float32) * 0.1
    b1 = jax.random.normal(k[1], (C,), jnp.float32) * 0.1
    w2_pt = jax.random.normal(k[2], (C, C, 3, 3), jnp.float32) * 0.1
    b2 = jax.random.normal(k[3], (C,), jnp.float32) * 0.1
    # BatchNorm affine params (PyTorch init gamma=1, beta=0), lightly perturbed but deterministic.
    g1 = 1.0 + 0.1 * jax.random.normal(k[4], (C,), jnp.float32)
    be1 = 0.1 * jax.random.normal(k[5], (C,), jnp.float32)
    g2 = 1.0 + 0.1 * jax.random.normal(k[6], (C,), jnp.float32)
    be2 = jnp.zeros((C,), jnp.float32)

    # (Cout, Cin, kh, kw) -> (9, Cin, Cout): w9[3*i+j, ci, co] = W_pt[co, ci, i, j]
    def to_w9(w_pt):
        return jnp.transpose(w_pt, (2, 3, 1, 0)).reshape(9, C, C)

    params = {
        "w1": to_w9(w1_pt), "b1": b1, "g1": g1, "be1": be1,
        "w2": to_w9(w2_pt), "b2": b2, "g2": g2, "be2": be2,
    }

    x = jax.random.normal(k[7], (N, C, H, W), jnp.float32)  # NCHW, like PyTorch

    out = jax.block_until_ready(block_type2_forward(x, params))
    ref = block_type2_reference(x, params)

    assert out.shape == (N, C, H, W)
    assert jnp.allclose(out, ref, atol=1e-3, rtol=1e-3), "Pallas output mismatch vs JAX reference"

    print("KERNEL_OK")
</pallas_src>

<mosaic_0001>
module attributes {stable_mosaic.version = 11 : i64} {
  func.func @fused_block2_kernel(%arg0: memref<4x512xf32, #tpu.memory_space<vmem>>, %arg1: memref<2x4x36xf32, #tpu.memory_space<vmem>>, %arg2: memref<4x4xf32, #tpu.memory_space<vmem>>, %arg3: memref<4x512xf32, #tpu.memory_space<vmem>>) attributes {dimension_semantics = [], scalar_prefetch = 0 : i64, scratch_operands = 0 : i64, tpu.core_type = #tpu.core_type<tc>} {
    %c0 = arith.constant 0 : index
    %c0_0 = arith.constant 0 : index
    %0 = vector.load %arg0[%c0, %c0_0] : memref<4x512xf32, #tpu.memory_space<vmem>>, vector<4x512xf32>
    %c0_1 = arith.constant 0 : index
    %c0_2 = arith.constant 0 : index
    %1 = vector.load %arg2[%c0_1, %c0_2] : memref<4x4xf32, #tpu.memory_space<vmem>>, vector<4x4xf32>
    %2 = tpu.iota {dimensions = array<i32: 1>} : vector<4x512xi32>
    %c15_i32 = arith.constant 15 : i32
    %3 = vector.broadcast %c15_i32 : i32 to vector<4x512xi32>
    %4 = arith.andi %2, %3 : vector<4x512xi32>
    %c4_i32 = arith.constant 4 : i32
    %5 = vector.broadcast %c4_i32 : i32 to vector<4x512xi32>
    %6 = arith.shrsi %2, %5 : vector<4x512xi32>
    %c15_i32_3 = arith.constant 15 : i32
    %7 = vector.broadcast %c15_i32_3 : i32 to vector<4x512xi32>
    %8 = arith.andi %6, %7 : vector<4x512xi32>
    %c0_i32 = arith.constant 0 : i32
    %9 = vector.broadcast %c0_i32 : i32 to vector<4x512xi32>
    %10 = arith.cmpi eq, %4, %9 : vector<4x512xi32>
    %c15_i32_4 = arith.constant 15 : i32
    %11 = vector.broadcast %c15_i32_4 : i32 to vector<4x512xi32>
    %12 = arith.cmpi eq, %4, %11 : vector<4x512xi32>
    %c0_i32_5 = arith.constant 0 : i32
    %13 = vector.broadcast %c0_i32_5 : i32 to vector<4x512xi32>
    %14 = arith.cmpi eq, %8, %13 : vector<4x512xi32>
    %c15_i32_6 = arith.constant 15 : i32
    %15 = vector.broadcast %c15_i32_6 : i32 to vector<4x512xi32>
    %16 = arith.cmpi eq, %8, %15 : vector<4x512xi32>
    %c0_7 = arith.constant 0 : index
    %c0_8 = arith.constant 0 : index
    %c0_9 = arith.constant 0 : index
    %17 = vector.load %arg1[%c0_7, %c0_8, %c0_9] : memref<2x4x36xf32, #tpu.memory_space<vmem>>, vector<1x4x36xf32>
    %18 = vector.shape_cast %17 : vector<1x4x36xf32> to vector<4x36xf32>
    %19 = vector.extract_strided_slice %0 {offsets = [0, 511], sizes = [4, 1], strides = [1, 1]} : vector<4x512xf32> to vector<4x1xf32>
    %20 = vector.extract_strided_slice %0 {offsets = [0, 0], sizes = [4, 511], strides = [1, 1]} : vector<4x512xf32> to vector<4x511xf32>
    %21 = tpu.concatenate %19, %20 in 1 : vector<4x1xf32>, vector<4x511xf32> -> vector<4x512xf32>
    %22 = arith.select %10, %0, %21 : vector<4x512xi1>, vector<4x512xf32>
    %23 = vector.extract_strided_slice %0 {offsets = [0, 1], sizes = [4, 511], strides = [1, 1]} : vector<4x512xf32> to vector<4x511xf32>
    %24 = vector.extract_strided_slice %0 {offsets = [0, 0], sizes = [4, 1], strides = [1, 1]} : vector<4x512xf32> to vector<4x1xf32>
    %25 = tpu.concatenate %23, %24 in 1 : vector<4x511xf32>, vector<4x1xf32> -> vector<4x512xf32>
    %26 = arith.select %12, %0, %25 : vector<4x512xi1>, vector<4x512xf32>
    %27 = vector.extract_strided_slice %22 {offsets = [0, 496], sizes = [4, 16], strides = [1, 1]} : vector<4x512xf32> to vector<4x16xf32>
    %28 = vector.extract_strided_slice %22 {offsets = [0, 0], sizes = [4, 496], strides = [1, 1]} : vector<4x512xf32> to vector<4x496xf32>
    %29 = tpu.concatenate %27, %28 in 1 : vector<4x16xf32>, vector<4x496xf32> -> vector<4x512xf32>
    %30 = arith.select %14, %22, %29 : vector<4x512xi1>, vector<4x512xf32>
    %31 = vector.extract_strided_slice %0 {offsets = [0, 496], sizes = [4, 16], strides = [1, 1]} : vector<4x512xf32> to vector<4x16xf32>
    %32 = vector.extract_strided_slice %0 {offsets = [0, 0], sizes = [4, 496], strides = [1, 1]} : vector<4x512xf32> to vector<4x496xf32>
    %33 = tpu.concatenate %31, %32 in 1 : vector<4x16xf32>, vector<4x496xf32> -> vector<4x512xf32>
    %34 = arith.select %14, %0, %33 : vector<4x512xi1>, vector<4x512xf32>
    %35 = vector.extract_strided_slice %26 {offsets = [0, 496], sizes = [4, 16], strides = [1, 1]} : vector<4x512xf32> to vector<4x16xf32>
    %36 = vector.extract_strided_slice %26 {offsets = [0, 0], sizes = [4, 496], strides = [1, 1]} : vector<4x512xf32> to vector<4x496xf32>
    %37 = tpu.concatenate %35, %36 in 1 : vector<4x16xf32>, vector<4x496xf32> -> vector<4x512xf32>
    %38 = arith.select %14, %26, %37 : vector<4x512xi1>, vector<4x512xf32>
    %39 = vector.extract_strided_slice %22 {offsets = [0, 16], sizes = [4, 496], strides = [1, 1]} : vector<4x512xf32> to vector<4x496xf32>
    %40 = vector.extract_strided_slice %22 {offsets = [0, 0], sizes = [4, 16], strides = [1, 1]} : vector<4x512xf32> to vector<4x16xf32>
    %41 = tpu.concatenate %39, %40 in 1 : vector<4x496xf32>, vector<4x16xf32> -> vector<4x512xf32>
    %42 = arith.select %16, %22, %41 : vector<4x512xi1>, vector<4x512xf32>
    %43 = vector.extract_strided_slice %0 {offsets = [0, 16], sizes = [4, 496], strides = [1, 1]} : vector<4x512xf32> to vector<4x496xf32>
    %44 = vector.extract_strided_slice %0 {offsets = [0, 0], sizes = [4, 16], strides = [1, 1]} : vector<4x512xf32> to vector<4x16xf32>
    %45 = tpu.concatenate %43, %44 in 1 : vector<4x496xf32>, vector<4x16xf32> -> vector<4x512xf32>
    %46 = arith.select %16, %0, %45 : vector<4x512xi1>, vector<4x512xf32>
    %47 = vector.extract_strided_slice %26 {offsets = [0, 16], sizes = [4, 496], strides = [1, 1]} : vector<4x512xf32> to vector<4x496xf32>
    %48 = vector.extract_strided_slice %26 {offsets = [0, 0], sizes = [4, 16], strides = [1, 1]} : vector<4x512xf32> to vector<4x16xf32>
    %49 = tpu.concatenate %47, %48 in 1 : vector<4x496xf32>, vector<4x16xf32> -> vector<4x512xf32>
    %50 = arith.select %16, %26, %49 : vector<4x512xi1>, vector<4x512xf32>
    %51 = tpu.concatenate %30, %34, %38, %22, %0, %26, %42, %46, %50 in 0 : vector<4x512xf32>, vector<4x512xf32>, vector<4x512xf32>, vector<4x512xf32>, vector<4x512xf32>, vector<4x512xf32>, vector<4x512xf32>, vector<4x512xf32>, vector<4x512xf32> -> vector<36x512xf32>
    %cst = arith.constant dense<0.000000e+00> : vector<4x512xf32>
    %52 = tpu.matmul %18, %51, %cst {dimension_numbers = #tpu.dot_dimension_numbers<[1], [0], [0], [1], [0, 0, 1, 1], [], []>} : vector<4x36xf32>, vector<36x512xf32>, vector<4x512xf32> -> vector<4x512xf32>
    %53 = vector.extract_strided_slice %1 {offsets = [0, 0], sizes = [4, 1], strides = [1, 1]} : vector<4x4xf32> to vector<4x1xf32>
    %54 = vector.extract_strided_slice %1 {offsets = [0, 1], sizes = [4, 1], strides = [1, 1]} : vector<4x4xf32> to vector<4x1xf32>
    %cst_10 = arith.constant dense<0.000000e+00> : vector<4xf32>
    %55 = vector.multi_reduction <add>, %52, %cst_10 [1] : vector<4x512xf32> to vector<4xf32>
    %56 = vector.shape_cast %55 : vector<4xf32> to vector<4x1xf32>
    %cst_11 = arith.constant 5.120000e+02 : f32
    %57 = vector.broadcast %cst_11 : f32 to vector<4x1xf32>
    %58 = arith.divf %56, %57 : vector<4x1xf32>
    %59 = vector.broadcast %58 : vector<4x1xf32> to vector<4x512xf32>
    %60 = arith.subf %52, %59 : vector<4x512xf32>
    %61 = arith.mulf %60, %60 : vector<4x512xf32>
    %cst_12 = arith.constant dense<0.000000e+00> : vector<4xf32>
    %62 = vector.multi_reduction <add>, %61, %cst_12 [1] : vector<4x512xf32> to vector<4xf32>
    %63 = vector.shape_cast %62 : vector<4xf32> to vector<4x1xf32>
    %cst_13 = arith.constant 5.120000e+02 : f32
    %64 = vector.broadcast %cst_13 : f32 to vector<4x1xf32>
    %65 = arith.divf %63, %64 : vector<4x1xf32>
    %cst_14 = arith.constant 9.99999974E-6 : f32
    %66 = vector.broadcast %cst_14 : f32 to vector<4x1xf32>
    %67 = arith.addf %65, %66 : vector<4x1xf32>
    %68 = math.rsqrt %67 : vector<4x1xf32>
    %69 = arith.mulf %53, %68 : vector<4x1xf32>
    %70 = arith.mulf %58, %69 : vector<4x1xf32>
    %71 = arith.subf %54, %70 : vector<4x1xf32>
    %72 = vector.broadcast %69 : vector<4x1xf32> to vector<4x512xf32>
    %73 = arith.mulf %52, %72 : vector<4x512xf32>
    %74 = vector.broadcast %71 : vector<4x1xf32> to vector<4x512xf32>
    %75 = arith.addf %73, %74 : vector<4x512xf32>
    %cst_15 = arith.constant 0.000000e+00 : f32
    %76 = vector.broadcast %cst_15 : f32 to vector<4x512xf32>
    %77 = arith.maximumf %75, %76 : vector<4x512xf32>
    %c1 = arith.constant 1 : index
    %c0_16 = arith.constant 0 : index
    %c0_17 = arith.constant 0 : index
    %78 = vector.load %arg1[%c1, %c0_16, %c0_17] : memref<2x4x36xf32, #tpu.memory_space<vmem>>, vector<1x4x36xf32>
    %79 = vector.shape_cast %78 : vector<1x4x36xf32> to vector<4x36xf32>
    %80 = vector.extract_strided_slice %77 {offsets = [0, 511], sizes = [4, 1], strides = [1, 1]} : vector<4x512xf32> to vector<4x1xf32>
    %81 = vector.extract_strided_slice %77 {offsets = [0, 0], sizes = [4, 511], strides = [1, 1]} : vector<4x512xf32> to vector<4x511xf32>
    %82 = tpu.concatenate %80, %81 in 1 : vector<4x1xf32>, vector<4x511xf32> -> vector<4x512xf32>
    %83 = arith.select %10, %77, %82 : vector<4x512xi1>, vector<4x512xf32>
    %84 = vector.extract_strided_slice %77 {offsets = [0, 1], sizes = [4, 511], strides = [1, 1]} : vector<4x512xf32> to vector<4x511xf32>
    %85 = vector.extract_strided_slice %77 {offsets = [0, 0], sizes = [4, 1], strides = [1, 1]} : vector<4x512xf32> to vector<4x1xf32>
    %86 = tpu.concatenate %84, %85 in 1 : vector<4x511xf32>, vector<4x1xf32> -> vector<4x512xf32>
    %87 = arith.select %12, %77, %86 : vector<4x512xi1>, vector<4x512xf32>
    %88 = vector.extract_strided_slice %83 {offsets = [0, 496], sizes = [4, 16], strides = [1, 1]} : vector<4x512xf32> to vector<4x16xf32>
    %89 = vector.extract_strided_slice %83 {offsets = [0, 0], sizes = [4, 496], strides = [1, 1]} : vector<4x512xf32> to vector<4x496xf32>
    %90 = tpu.concatenate %88, %89 in 1 : vector<4x16xf32>, vector<4x496xf32> -> vector<4x512xf32>
    %91 = arith.select %14, %83, %90 : vector<4x512xi1>, vector<4x512xf32>
    %92 = vector.extract_strided_slice %77 {offsets = [0, 496], sizes = [4, 16], strides = [1, 1]} : vector<4x512xf32> to vector<4x16xf32>
    %93 = vector.extract_strided_slice %77 {offsets = [0, 0], sizes = [4, 496], strides = [1, 1]} : vector<4x512xf32> to vector<4x496xf32>
    %94 = tpu.concatenate %92, %93 in 1 : vector<4x16xf32>, vector<4x496xf32> -> vector<4x512xf32>
    %95 = arith.select %14, %77, %94 : vector<4x512xi1>, vector<4x512xf32>
    %96 = vector.extract_strided_slice %87 {offsets = [0, 496], sizes = [4, 16], strides = [1, 1]} : vector<4x512xf32> to vector<4x16xf32>
    %97 = vector.extract_strided_slice %87 {offsets = [0, 0], sizes = [4, 496], strides = [1, 1]} : vector<4x512xf32> to vector<4x496xf32>
    %98 = tpu.concatenate %96, %97 in 1 : vector<4x16xf32>, vector<4x496xf32> -> vector<4x512xf32>
    %99 = arith.select %14, %87, %98 : vector<4x512xi1>, vector<4x512xf32>
    %100 = vector.extract_strided_slice %83 {offsets = [0, 16], sizes = [4, 496], strides = [1, 1]} : vector<4x512xf32> to vector<4x496xf32>
    %101 = vector.extract_strided_slice %83 {offsets = [0, 0], sizes = [4, 16], strides = [1, 1]} : vector<4x512xf32> to vector<4x16xf32>
    %102 = tpu.concatenate %100, %101 in 1 : vector<4x496xf32>, vector<4x16xf32> -> vector<4x512xf32>
    %103 = arith.select %16, %83, %102 : vector<4x512xi1>, vector<4x512xf32>
    %104 = vector.extract_strided_slice %77 {offsets = [0, 16], sizes = [4, 496], strides = [1, 1]} : vector<4x512xf32> to vector<4x496xf32>
    %105 = vector.extract_strided_slice %77 {offsets = [0, 0], sizes = [4, 16], strides = [1, 1]} : vector<4x512xf32> to vector<4x16xf32>
    %106 = tpu.concatenate %104, %105 in 1 : vector<4x496xf32>, vector<4x16xf32> -> vector<4x512xf32>
    %107 = arith.select %16, %77, %106 : vector<4x512xi1>, vector<4x512xf32>
    %108 = vector.extract_strided_slice %87 {offsets = [0, 16], sizes = [4, 496], strides = [1, 1]} : vector<4x512xf32> to vector<4x496xf32>
    %109 = vector.extract_strided_slice %87 {offsets = [0, 0], sizes = [4, 16], strides = [1, 1]} : vector<4x512xf32> to vector<4x16xf32>
    %110 = tpu.concatenate %108, %109 in 1 : vector<4x496xf32>, vector<4x16xf32> -> vector<4x512xf32>
    %111 = arith.select %16, %87, %110 : vector<4x512xi1>, vector<4x512xf32>
    %112 = tpu.concatenate %91, %95, %99, %83, %77, %87, %103, %107, %111 in 0 : vector<4x512xf32>, vector<4x512xf32>, vector<4x512xf32>, vector<4x512xf32>, vector<4x512xf32>, vector<4x512xf32>, vector<4x512xf32>, vector<4x512xf32>, vector<4x512xf32> -> vector<36x512xf32>
    %cst_18 = arith.constant dense<0.000000e+00> : vector<4x512xf32>
    %113 = tpu.matmul %79, %112, %cst_18 {dimension_numbers = #tpu.dot_dimension_numbers<[1], [0], [0], [1], [0, 0, 1, 1], [], []>} : vector<4x36xf32>, vector<36x512xf32>, vector<4x512xf32> -> vector<4x512xf32>
    %114 = vector.extract_strided_slice %1 {offsets = [0, 2], sizes = [4, 1], strides = [1, 1]} : vector<4x4xf32> to vector<4x1xf32>
    %115 = vector.extract_strided_slice %1 {offsets = [0, 3], sizes = [4, 1], strides = [1, 1]} : vector<4x4xf32> to vector<4x1xf32>
    %cst_19 = arith.constant dense<0.000000e+00> : vector<4xf32>
    %116 = vector.multi_reduction <add>, %113, %cst_19 [1] : vector<4x512xf32> to vector<4xf32>
    %117 = vector.shape_cast %116 : vector<4xf32> to vector<4x1xf32>
    %cst_20 = arith.constant 5.120000e+02 : f32
    %118 = vector.broadcast %cst_20 : f32 to vector<4x1xf32>
    %119 = arith.divf %117, %118 : vector<4x1xf32>
    %120 = vector.broadcast %119 : vector<4x1xf32> to vector<4x512xf32>
    %121 = arith.subf %113, %120 : vector<4x512xf32>
    %122 = arith.mulf %121, %121 : vector<4x512xf32>
    %cst_21 = arith.constant dense<0.000000e+00> : vector<4xf32>
    %123 = vector.multi_reduction <add>, %122, %cst_21 [1] : vector<4x512xf32> to vector<4xf32>
    %124 = vector.shape_cast %123 : vector<4xf32> to vector<4x1xf32>
    %cst_22 = arith.constant 5.120000e+02 : f32
    %125 = vector.broadcast %cst_22 : f32 to vector<4x1xf32>
    %126 = arith.divf %124, %125 : vector<4x1xf32>
    %cst_23 = arith.constant 9.99999974E-6 : f32
    %127 = vector.broadcast %cst_23 : f32 to vector<4x1xf32>
    %128 = arith.addf %126, %127 : vector<4x1xf32>
    %129 = math.rsqrt %128 : vector<4x1xf32>
    %130 = arith.mulf %114, %129 : vector<4x1xf32>
    %131 = arith.mulf %119, %130 : vector<4x1xf32>
    %132 = arith.subf %115, %131 : vector<4x1xf32>
    %133 = vector.broadcast %130 : vector<4x1xf32> to vector<4x512xf32>
    %134 = arith.mulf %113, %133 : vector<4x512xf32>
    %135 = vector.broadcast %132 : vector<4x1xf32> to vector<4x512xf32>
    %136 = arith.addf %134, %135 : vector<4x512xf32>
    %137 = arith.addf %136, %0 : vector<4x512xf32>
    %c0_24 = arith.constant 0 : index
    %c0_25 = arith.constant 0 : index
    %138 = vector.load %arg3[%c0_24, %c0_25] : memref<4x512xf32, #tpu.memory_space<vmem>>, vector<4x512xf32>
    tpu.vector_store %arg3[%c0_24, %c0_25], %137 {strides = array<i32>} : memref<4x512xf32, #tpu.memory_space<vmem>>, vector<4x512xf32>,
    return
  }
}

</mosaic_0001>

<bundles_post_ra>
// kernel: block_type2_forward.1
= control target key start
LH: loop header
LB: loop body
LE: loop exit
PB: predicated region body
PF: predicated region fallthrough
CT: control target
= control target key end

     0   :  { %s1166_s16 = smov 127   ;;  %s1167_s17 = smov 1   ;;  %v17_v7 = vlaneseq  ;;  %vm1854_vm0 = vcmask 7168   ;;  %vm1853_vm2 = vcmask 1039360   ;;  %v1170_v58 = vmov 0.0   ;;  %s1849_s0 = inlined_call_operand.vmem [shape: f32[4,512], index: 0, kind: input, shape index: {}]   ;;  %s1850_s1 = inlined_call_operand.vmem [shape: f32[2,4,36], index: 1, kind: input, shape index: {}]   ;;  %s1851_s2 = inlined_call_operand.vmem [shape: f32[4,4], index: 2, kind: input, shape index: {}]   ;;  %s1852_s3 = inlined_call_operand.vmem [shape: f32[4,512], index: 3, kind: output, shape index: {}]  }
   0x1   :  { %v1198_v0 = vld [vmem:[%s1849_s0] sm:$0xff]  ;;  %v1203_v1 = vld [vmem:[%s1849_s0 + $0x8] sm:$0xff]  ;;  %s1168_s18 = smov 112   ;;  %s1169_s19 = smov 16   ;;  %374 = vmatprep.mubr.f32.mxu0 %v1170_v58  ;;  %445 = vmatprep.mubr.f32.mxu1 %v1170_v58  ;;  %vm1855_vm10 = vcmask 916480   ;;  %vm1860_vm11 = vcmask 130048  }
   0x2   :  { %79 = vrot.lane.b32.xlu1 %v1198_v0, %s1166_s16  ;;  %v1209_v2 = vcombine.high %v1203_v1, %v1203_v1  ;;  %v1213_v3 = vcombine.high %v1198_v0, %v1198_v0  ;;  %v1231_v8 = vand.u32 127, %v17_v7  ;;  %vm277_vm12 = vcmask 1043456  }
   0x4   :  { %v1034_v4 = vpack.i.bf16 %v1198_v0, %v1209_v2  ;;  %v1039_v5 = vpack.i.bf16 %v1203_v1, %v1213_v3  ;;  %v1044_v6 = vpack.i.bf16 %v1213_v3, %v1198_v0  ;;  %v1234_v10 = vadd.s32 128, %v1231_v8 }
   0x5   :  { %v22_v11 = vand.u32 15, %v1231_v8  ;;  %v1238_v12 = vadd.s32 384, %v1231_v8  ;;  %v1257_v25 = vadd.s32 256, %v1231_v8  ;;  %v26_v62 = vshra.s32 %v1231_v8, 4 }
   0x6   :  { %1035 = vrot.lane.b32.xlu0 %v1034_v4, %s1167_s17  ;;  %81 = vrot.lane.b32.xlu1 %v1213_v3, %s1166_s16  ;;  %v23_v15 = vand.u32 15, %v1234_v10  ;;  %v27_v59 = vshra.s32 %v1234_v10, 4 }
   0x7   :  { %vm1241_vm1 = vcmp.eq.s32.totalorder %v22_v11, 0  ;;  %v25_v19 = vand.u32 15, %v1238_v12  ;;  %vm1247_vm3 = vcmp.eq.s32.totalorder %v22_v11, 15  ;;  %v24_v40 = vand.u32 15, %v1257_v25 }
   0x8   :  { %vm1259_vm4 = vcmp.eq.s32.totalorder %v23_v15, 0  ;;  %vm1278_vm7 = vcmp.eq.s32.totalorder %v23_v15, 15  ;;  %v29_v63 = vshra.s32 %v1238_v12, 4  ;;  %v28_v4 = vshra.s32 %v1257_v25, 4 }
   0x9   :  { %vm1266_vm5 = vcmp.eq.s32.totalorder %v25_v19, 0  ;;  %vm1270_vm6 = vcmp.eq.s32.totalorder %v25_v19, 15  ;;  %vm1311_vm8 = vcmp.eq.s32.totalorder %v24_v40, 15  ;;  %vm1320_vm9 = vcmp.eq.s32.totalorder %v24_v40, 0 }
   0xa   :  { %85 = vrot.lane.b32.xlu1 %v1209_v2, %s1166_s16  ;;  %1040 = vrot.lane.b32.xlu0 %v1039_v5, %s1167_s17  ;;  %v1370_v10 = vand.u32 15, %v26_v62 }
   0xc   :  { %vm1858_vm15 = vcmp.eq.s32.totalorder %v1370_v10, 0 }
   0xe   :  { %83 = vrot.lane.b32.xlu0 %v1203_v1, %s1166_s16  ;;  %1050 = vrot.lane.b32.xlu1 %v1039_v5, %s1168_s18  ;;  %v1366_v5 = vand.u32 15, %v27_v59 }
  0x10   :  { %vm1856_vm13 = vcmp.eq.s32.totalorder %v1366_v5, 15  ;;  %vm1857_vm14 = vcmp.eq.s32.totalorder %v1366_v5, 0 }
  0x12   :  { %1045 = vrot.lane.b32.xlu0 %v1044_v6, %s1169_s19 }
  0x74   :  { %v80_v9 = vpop.permute.xlu1 %79 }
  0x78   :  { %v1036_v13 = vpop.permute.xlu0 %1035  ;;  %v82_v14 = vpop.permute.xlu1 %81 }
  0x79   :  { %v1038_v16 = vunpack.i.h.bf16 %v1036_v13  ;;  %v1037_v17 = vunpack.i.l.bf16 %v1036_v13  ;;  %v88_v27 = vsel %vm1853_vm2, %v80_v9, %v82_v14  ;;  %v1372_v13 = vand.u32 15, %v29_v63 }
  0x7a   :  { %v1285_v37 = vsel %vm1247_vm3, %v1198_v0, %v88_v27 }
  0x7b   :  { %v72_v20 = vsel %vm1854_vm0, %v1037_v17, %v1038_v16 }
  0x7c   :  { %v86_v22 = vpop.permute.xlu1 %85  ;;  %v1041_v23 = vpop.permute.xlu0 %1040  ;;  %v1254_v24 = vsel %vm1241_vm1, %v1198_v0, %v72_v20  ;;  %v257_v20 = vrot.slane %v1285_v37, 4 }
  0x7d   :  { %v1043_v28 = vunpack.i.h.bf16 %v1041_v23  ;;  %v1042_v29 = vunpack.i.l.bf16 %v1041_v23  ;;  %v1054_v30 = vpack.i.bf16 %v1254_v24, %v1209_v2  ;;  %v96_v33 = vsel %vm1853_vm2, %v86_v22, %v80_v9 }
  0x7e   :  { %v1299_v43 = vsel %vm1270_vm6, %v1209_v2, %v96_v33  ;;  %v249_v19 = vrot.slane %v1254_v24, 4 }
  0x7f   :  { %v67_v34 = vsel %vm1854_vm0, %v1043_v28, %v1037_v17  ;;  %v65_v35 = vsel %vm1854_vm0, %v1038_v16, %v1042_v29  ;;  %1055 = vrot.lane.b32.xlu1 %v1054_v30, %s1169_s19  ;;  %v66_v49 = vsel %vm1854_vm0, %v1042_v29, %v1043_v28  ;;  %v1069_v51 = vpack.i.bf16 %v1299_v43, %v1203_v1 }
  0x80   :  { %v84_v38 = vpop.permute.xlu0 %83  ;;  %v1290_v39 = vsel %vm1259_vm4, %v1213_v3, %v65_v35  ;;  %v1304_v44 = vsel %vm1266_vm5, %v1209_v2, %v67_v34  ;;  %v1338_v54 = vsel %vm1320_vm9, %v1203_v1, %v66_v49  ;;  %v1361_v60 = vpop.permute.xlu1 %1050  ;;  %vm1859_vm0 = vcmp.eq.s32.totalorder %v1372_v13, 0 }
  0x81   :  { %v89_v41 = vsel %vm1853_vm2, %v82_v14, %v84_v38  ;;  %v1059_v42 = vpack.i.bf16 %v1285_v37, %v1290_v39  ;;  %v90_v47 = vsel %vm1853_vm2, %v84_v38, %v86_v22  ;;  %v1079_v53 = vpack.i.bf16 %v1290_v39, %v1198_v0 }
  0x82   :  { %v1309_v45 = vsel %vm1278_vm7, %v1213_v3, %v89_v41  ;;  %v1330_v52 = vsel %vm1311_vm8, %v1203_v1, %v90_v47  ;;  %v1089_v56 = vpack.i.bf16 %v1304_v44, %v1209_v2  ;;  %v1084_v57 = vpack.i.bf16 %v1254_v24, %v1338_v54 }
  0x83   :  { %1060 = vrot.lane.b32.xlu0 %v1059_v42, %s1169_s19  ;;  %v1064_v48 = vpack.i.bf16 %v1304_v44, %v1309_v45  ;;  %v1074_v55 = vpack.i.bf16 %v1330_v52, %v1338_v54  ;;  %v1053_v6 = vunpack.i.h.bf16 %v1361_v60  ;;  %v1052_v7 = vunpack.i.l.bf16 %v1361_v60 }
  0x84   :  { %v1046_v61 = vpop.permute.xlu0 %1045  ;;  %v1374_v14 = vand.u32 15, %v28_v4  ;;  %vm46_vm2 = vcmp.eq.s32.totalorder %v1370_v10, 15  ;;  %v250_v23 = vrot.slane %v1290_v39, 4  ;;  %v252_v25 = vrot.slane %v1304_v44, 4 }
  0x85   :  { %1065 = vrot.lane.b32.xlu1 %v1064_v48, %s1169_s19  ;;  %v1048_v9 = vunpack.i.h.bf16 %v1046_v61  ;;  %v1047_v11 = vunpack.i.l.bf16 %v1046_v61  ;;  %v204_v15 = vsel %vm1855_vm10, %v1052_v7, %v1053_v6  ;;  %v251_v35 = vrot.slane %v1338_v54, 4 }
  0x86   :  { %v1396_v27 = vsel %vm1856_vm13, %v1213_v3, %v204_v15  ;;  %v258_v38 = vrot.slane %v1309_v45, 4  ;;  %v260_v40 = vrot.slane %v1299_v43, 4  ;;  %vm49_vm13 = vcmp.eq.s32.totalorder %v1372_v13, 15 }
  0x87   :  { %1070 = vrot.lane.b32.xlu0 %v1069_v51, %s1169_s19  ;;  %v136_v16 = vsel %vm1860_vm11, %v1047_v11, %v1048_v9  ;;  %vm1861_vm10 = vcmp.eq.s32.totalorder %v1374_v14, 15  ;;  %v270_v49 = vrot.slane %v1396_v27, 4 }
  0x88   :  { %v145_v30 = vsel %vm1857_vm14, %v1213_v3, %v136_v16  ;;  %v1425_v15 = vsel %vm277_vm12, %v1213_v3, %v258_v38 }
  0x89   :  { %1080 = vrot.lane.b32.xlu1 %v1079_v53, %s1168_s18 }
  0x8b   :  { %1075 = vrot.lane.b32.xlu0 %v1074_v55, %s1169_s19  ;;  %v242_v55 = vrot.slane %v145_v30, 4 }
  0x8d   :  { %1090 = vrot.lane.b32.xlu1 %v1089_v56, %s1168_s18  ;;  %v259_v56 = vrot.slane %v1330_v52, 4 }
  0x8f   :  { %1085 = vrot.lane.b32.xlu0 %v1084_v57, %s1168_s18 }
  0x91   :  { %220 = vrot.lane.b32.xlu1 %v1330_v52, %s1168_s18 }
  0x93   :  { %218 = vrot.lane.b32.xlu0 %v1309_v45, %s1168_s18 }
  0x95   :  { %222 = vrot.lane.b32.xlu1 %v1299_v43, %s1168_s18 }
  0x97   :  { %216 = vrot.lane.b32.xlu0 %v1285_v37, %s1168_s18 }
  0xf1   :  { %v1056_v8 = vpop.permute.xlu1 %1055 }
  0xf2   :  { %v1057_v12 = vunpack.i.l.bf16 %v1056_v8  ;;  %v1058_v28 = vunpack.i.h.bf16 %v1056_v8 }
  0xf4   :  { %v143_v17 = vsel %vm1860_vm11, %v1057_v12, %v1047_v11 }
  0xf5   :  { %v1061_v22 = vpop.permute.xlu0 %1060  ;;  %v144_v34 = vsel %vm1858_vm15, %v1198_v0, %v143_v17 }
  0xf6   :  { %v1062_v29 = vunpack.i.l.bf16 %v1061_v22  ;;  %v1063_v41 = vunpack.i.h.bf16 %v1061_v22  ;;  %v241_v8 = vrot.slane %v144_v34, 4 }
  0xf7   :  { %v1066_v33 = vpop.permute.xlu1 %1065 }
  0xf8   :  { %v1068_v42 = vunpack.i.h.bf16 %v1066_v33  ;;  %v1067_v47 = vunpack.i.l.bf16 %v1066_v33  ;;  %v115_v48 = vsel %vm1860_vm11, %v1058_v28, %v1062_v29 }
  0xf9   :  { %v1071_v51 = vpop.permute.xlu0 %1070  ;;  %v124_v53 = vsel %vm1857_vm14, %v1290_v39, %v115_v48 }
  0xfa   :  { %v122_v57 = vsel %vm1860_vm11, %v1068_v42, %v1058_v28  ;;  %v1073_v59 = vunpack.i.h.bf16 %v1071_v51  ;;  %v1072_v61 = vunpack.i.l.bf16 %v1071_v51  ;;  %v161_v62 = vsel %vm1860_vm11, %v1063_v41, %v1067_v47 }
  0xfb   :  { %v1081_v63 = vpop.permute.xlu1 %1080  ;;  %v170_v4 = vsel %vm1857_vm14, %v1309_v45, %v161_v62  ;;  %v123_v11 = vsel %vm1858_vm15, %v1254_v24, %v122_v57  ;;  %v279_v28 = vsel %vm277_vm12, %v124_v53, %v242_v55  ;;  %vm1878_vm14 = vcmask 916480  }
  0xfc   :  { %v137_v16 = vsel %vm1860_vm11, %v1048_v9, %v1072_v61  ;;  %v138_v17 = vsel %vm1860_vm11, %v1072_v61, %v1057_v12  ;;  %v168_v22 = vsel %vm1860_vm11, %v1073_v59, %v1063_v41  ;;  %v1082_v30 = vunpack.i.l.bf16 %v1081_v63 }
  0xfd   :  { %v1076_v33 = vpop.permute.xlu0 %1075  ;;  %v283_v48 = vsel %vm277_vm12, %v170_v4, %v250_v23  ;;  %v169_v34 = vsel %vm1858_vm15, %v1285_v37, %v168_v22  ;;  %v278_v51 = vsel %vm277_vm12, %v123_v11, %v241_v8  ;;  %v1083_v12 = vunpack.i.h.bf16 %v1081_v63 }
  0xfe   :  { %v1078_v38 = vunpack.i.h.bf16 %v1076_v33  ;;  %v1077_v57 = vunpack.i.l.bf16 %v1076_v33  ;;  %v993_v62 = vpack.c.bf16 %v283_v48, %v279_v28  ;;  %v282_v9 = vsel %vm277_vm12, %v169_v34, %v249_v19 }
  0xff   :  { %v203_v41 = vsel %vm1878_vm14, %v1082_v30, %v1052_v7  ;;  %v1091_v53 = vpop.permute.xlu1 %1090  ;;  %v995_v55 = vpack.c.bf16 %v282_v9, %v278_v51  ;;  %v1442_v23 = vsel %vm277_vm12, %v1209_v2, %v260_v40  ;;  %v147_v19 = vsel %vm1859_vm0, %v1209_v2, %v138_v17 }
 0x100   :  { %v212_v61 = vsel %vm46_vm2, %v1198_v0, %v203_v41  ;;  %v162_v4 = vsel %vm1860_vm11, %v1067_v47, %v1078_v38  ;;  %994 = vmatprep.subr.bf16.mxu0 %v993_v62  ;;  %vm1879_vm14 = vcmp.eq.s32.totalorder %v1374_v14, 0  ;;  %v116_v63 = vsel %vm1860_vm11, %v1062_v29, %v1077_v57 }
 0x101   :  { %v146_v7 = vsel %vm1879_vm14, %v1203_v1, %v137_v16  ;;  %v1092_v11 = vunpack.i.l.bf16 %v1091_v53  ;;  %v1086_v40 = vpop.permute.xlu0 %1085  ;;  %996 = vmatpush1.bf16.msra.mxu0 %v995_v55  ;;  %v117_v8 = vsel %vm1860_vm11, %v1077_v57, %v1068_v42  ;;  %v163_v22 = vsel %vm1860_vm11, %v1078_v38, %v1073_v59 }
 0x102   :  { %v1093_v28 = vunpack.i.h.bf16 %v1091_v53  ;;  %v1088_v47 = vunpack.i.h.bf16 %v1086_v40  ;;  %v1087_v33 = vunpack.i.l.bf16 %v1086_v40  ;;  %v172_v17 = vsel %vm1859_vm0, %v1299_v43, %v163_v22 }
 0x103   :  { %v269_v48 = vrot.slane %v212_v61, 4  ;;  %vm1880_vm14 = vcmask 916480   ;;  %v126_v42 = vsel %vm1859_vm0, %v1304_v44, %v117_v8  ;;  %v221_v51 = vpop.permute.xlu1 %220  ;;  %v244_v38 = vrot.slane %v147_v19, 4 }
 0x104   :  { %v205_v16 = vsel %vm1880_vm14, %v1053_v6, %v1092_v11  ;;  %vm1881_vm15 = vmmov %vm1880_vm14  ;;  %v285_v60 = vsel %vm277_vm12, %v172_v17, %v252_v25  ;;  %v190_v57 = vsel %vm1880_vm14, %v1093_v28, %v1088_v47  ;;  %vm1884_vm11 = vcmp.eq.s32.totalorder %v1374_v14, 0 }
 0x105   :  { %v211_v29 = vsel %vm1881_vm15, %v1092_v11, %v1082_v30  ;;  %v214_v59 = vsel %vm1861_vm10, %v1203_v1, %v205_v16  ;;  %vm1882_vm15 = vmmov %vm1880_vm14  ;;  %v219_v9 = vpop.permute.xlu0 %218  ;;  %v281_v53 = vsel %vm277_vm12, %v126_v42, %v244_v38  ;;  %v125_v55 = vsel %vm1884_vm11, %v1338_v54, %v116_v63 }
 0x106   :  { %v215_v34 = vsel %vm49_vm13, %v1209_v2, %v211_v29  ;;  %v182_v30 = vsel %vm1882_vm15, %v1088_v47, %v1083_v12  ;;  %vm1883_vm0 = vmmov %vm1880_vm14  ;;  %v271_v41 = vrot.slane %v214_v59, 4  ;;  %v1001_v25 = vpack.c.bf16 %v285_v60, %v281_v53 }
 0x107   :  { %v272_v6 = vrot.slane %v215_v34, 4  ;;  %v183_v62 = vsel %vm1883_vm0, %v1083_v12, %v1087_v33  ;;  %vm1885_vm10 = vmmov %vm1884_vm11  ;;  %v243_v19 = vrot.slane %v146_v7, 4  ;;  %vm1886_vm0 = vcmp.eq.s32.totalorder %v1366_v5, 15  ;;  %v223_v47 = vpop.permute.xlu1 %222 }
 0x108   :  { %v171_v61 = vsel %vm1885_vm10, %v1330_v52, %v162_v4  ;;  %v192_v12 = vsel %vm1886_vm0, %v1290_v39, %v183_v62  ;;  %vm1887_vm15 = vmmov %vm1880_vm14  ;;  %v194_v4 = vsel %vm49_vm13, %v1304_v44, %v190_v57  ;;  %v191_v7 = vsel %vm46_vm2, %v1254_v24, %v182_v30  ;;  %1002 = vmatprep.subr.bf16.mxu1 %v1001_v25 }
 0x109   :  { %v284_v11 = vsel %vm277_vm12, %v171_v61, %v251_v35  ;;  %v184_v40 = vsel %vm1887_vm15, %v1087_v33, %v1093_v28  ;;  %v291_v63 = vsel %vm277_vm12, %v192_v12, %v270_v49  ;;  %v280_v35 = vsel %vm277_vm12, %v125_v55, %v243_v19  ;;  %v217_v8 = vpop.permute.xlu0 %216  ;;  %vm1888_vm10 = vmmov %vm1880_vm14 }
 0x10a   :  { %v997_v39 = vpack.c.bf16 %v291_v63, %v1425_v15  ;;  %v293_v22 = vsel %vm277_vm12, %v194_v4, %v272_v6  ;;  %v290_v27 = vsel %vm277_vm12, %v191_v7, %v269_v48  ;;  %v225_v49 = vsel %vm1888_vm10, %v219_v9, %v221_v51  ;;  %vm1889_vm11 = vmmov %vm1888_vm10 }
 0x10b   :  { %v1003_v28 = vpack.c.bf16 %v284_v11, %v280_v35  ;;  %v1005_v44 = vpack.c.bf16 %v293_v22, %v1442_v23  ;;  %v286_v24 = vsel %vm277_vm12, %v1198_v0, %v257_v20  ;;  %v232_v33 = vsel %vm1889_vm11, %v223_v47, %v217_v8  ;;  %vm1891_vm0 = vmmov %vm1888_vm10 }
 0x10c   :  { %998 = vmatprep.subr.bf16.mxu0 %v997_v39  ;;  %v999_v17 = vpack.c.bf16 %v290_v27, %v286_v24  ;;  %vm1890_vm14 = vcmp.eq.s32.totalorder %v1374_v14, 15  ;;  %v288_v48 = vsel %vm277_vm12, %v1203_v1, %v259_v56  ;;  %v224_v16 = vsel %vm1891_vm0, %v217_v8, %v219_v9  ;;  %v50_v1 = vld [vmem:[%s1850_s1] sm:$0xf]  ;;  %vm1893_vm11 = vmmov %vm1891_vm0 }
 0x10d   :  { %v193_v15 = vsel %vm1890_vm14, %v1338_v54, %v184_v40  ;;  %1004 = vmatpush1.bf16.msra.mxu1 %v1003_v28  ;;  %vm1892_vm15 = vcmp.eq.s32.totalorder %v1366_v5, 15  ;;  %v236_v54 = vsel %vm49_vm13, %v1299_v43, %v232_v33  ;;  %vm294_vm10 = vcmask 293888   ;;  %v1557_v28 = vld [vmem:[%s1851_s2] sm:$0xf] }
 0x10e   :  { %v292_v23 = vsel %vm277_vm12, %v193_v15, %v271_v41  ;;  %1006 = vmatprep.subr.bf16.mxu1 %v1005_v44  ;;  %1000 = vmatpush1.bf16.msra.mxu0 %v999_v17  ;;  %v234_v20 = vsel %vm1892_vm15, %v1309_v45, %v225_v49  ;;  %v226_v56 = vsel %vm1893_vm11, %v221_v51, %v223_v47  ;;  %v1171_v8 = vmov 0  }
 0x10f   :  { %v1007_v0 = vpack.c.bf16 %v292_v23, %v288_v48  ;;  %980 = vmatprep.subr.msk.mxu0 %vm277_vm12, %v234_v20  ;;  %v233_v29 = vsel %vm46_vm2, %v1285_v37, %v224_v16  ;;  %v235_v43 = vsel %vm1890_vm14, %v1330_v52, %v226_v56  ;;  %1094 = vset.pattern.permute.xlu1 %v1171_v8  ;;  %v1172_v49 = vmov 1  }
 0x110   :  { %1095 = vset.pattern.permute.xlu0 %v1172_v49  ;;  %vm1894_vm0 = vcmask 7168   ;;  %vm1897_vm14 = vcmask 1039360  }
 0x111   :  { %1008 = vmatpush1.bf16.msra.mxu1 %v1007_v0  ;;  %vm1895_vm15 = vmmov %vm1894_vm0 }
 0x112   :  { %983 = vmatprep.subr.msk.mxu1 %vm277_vm12, %v236_v54  ;;  %981 = vmatpush1.msk.msra.mxu0 %vm277_vm12, %v233_v29  ;;  %vm1896_vm11 = vmmov %vm1894_vm0 }
 0x113   :  { %982 = vmatmul.mubr.msk.f32.vlgmr.msra.gmra.mrb[0].mxu0 %vm294_vm10, %v50_v1 }
 0x114   :  { %829 = vmatprep.mubr.f32.mxu0 %v1170_v58 }
 0x115   :  { %984 = vmatpush1.msk.msra.mxu1 %vm277_vm12, %v235_v43 }
 0x116   :  { %985 = vmatmul.mubr.msk.f32.vlgmr.msra.gmra.mrb[0].mxu1 %vm294_vm10, %v50_v1 }
 0x117   :  { %900 = vmatprep.mubr.f32.mxu1 %v1170_v58 }
 0x1e6   :  { %v376_v45 = vpop.f32.mrb[0].mxu0 }
 0x1e7   :  { %v452_v37 = vsel %vm277_vm12, %v376_v45, 0.0  ;;  %v378_v42 = vpop.f32.mrb[1].mxu0 }
 0x1e8   :  { %v453_v59 = vsel %vm277_vm12, %v378_v42, 0.0 }
 0x1e9   :  { %v454_v34 = vadd.f32 %v453_v59, %v452_v37  ;;  %v447_v51 = vpop.f32.mrb[0].mxu1 }
 0x1ea   :  { %v455_v38 = vsel %vm277_vm12, %v447_v51, 0.0  ;;  %v449_v60 = vpop.f32.mrb[1].mxu1 }
 0x1eb   :  { %v456_v52 = vadd.f32 %v455_v38, %v454_v34  ;;  %v457_v6 = vsel %vm277_vm12, %v449_v60, 0.0 }
 0x1ed   :  { %v458_v30 = vadd.f32 %v457_v6, %v456_v52 }
 0x1ef   :  { %459 = vadd.xlane.f32.xlu0 %v458_v30 }
 0x27c   :  { %v460_v57 = vpop.xlane.xlu0 %459 }
 0x27d   :  { %v462_v62 = vmul.f32 0.001953125, %v460_v57 }
 0x27f   :  { %v463_v9 = vsub.f32 %v376_v45, %v462_v62  ;;  %v464_v58 = vsub.f32 %v378_v42, %v462_v62  ;;  %v465_v41 = vsub.f32 %v447_v51, %v462_v62  ;;  %v466_v53 = vsub.f32 %v449_v60, %v462_v62 }
 0x281   :  { %v467_v55 = vmul.f32 %v463_v9, %v463_v9  ;;  %v468_v61 = vmul.f32 %v464_v58, %v464_v58  ;;  %v469_v25 = vmul.f32 %v465_v41, %v465_v41  ;;  %v470_v19 = vmul.f32 %v466_v53, %v466_v53 }
 0x283   :  { %v471_v11 = vsel %vm277_vm12, %v467_v55, 0.0  ;;  %v472_v12 = vsel %vm277_vm12, %v468_v61, 0.0  ;;  %v474_v63 = vsel %vm277_vm12, %v469_v25, 0.0  ;;  %v476_v7 = vsel %vm277_vm12, %v470_v19, 0.0 }
 0x284   :  { %v473_v40 = vadd.f32 %v472_v12, %v471_v11 }
 0x286   :  { %v475_v4 = vadd.f32 %v474_v63, %v473_v40 }
 0x288   :  { %v477_v35 = vadd.f32 %v476_v7, %v475_v4 }
 0x28a   :  { %478 = vadd.xlane.f32.xlu1 %v477_v35 }
 0x317   :  { %v479_v39 = vpop.xlane.xlu1 %478 }
 0x318   :  { %v480_v22 = vmul.f32 0.001953125, %v479_v39 }
 0x31a   :  { %v481_v27 = vadd.f32 1e-05, %v480_v22 }
 0x31c   :  { %1160 = vrsqrt.f32 %v481_v27 }
 0x326   :  { %v1161_v47 = vpop.eup %1160 }
 0x327   :  { %v483_v44 = vmul.f32 %v1161_v47, %v1557_v28 }
 0x329   :  { %492 = vperm.xlu1 %1094, %v483_v44   ;;  %v484_v24 = vmul.f32 %v483_v44, %v462_v62 }
 0x32b   :  { %486 = vrot.lane.b32.xlu0 %v484_v24, %s1167_s17 }
 0x39d   :  { %v487_v33 = vpop.permute.xlu0 %486 }
 0x39e   :  { %v489_v17 = vsub.f32 %v1557_v28, %v487_v33 }
 0x3a0   :  { %501 = vperm.xlu0 %1095, %v489_v17  }
 0x3a8   :  { %v493_v15 = vpop.permute.xlu1 %492 }
 0x3a9   :  { %v495_v48 = vmul.f32 %v493_v15, %v376_v45  ;;  %v496_v23 = vmul.f32 %v493_v15, %v378_v42  ;;  %v497_v16 = vmul.f32 %v493_v15, %v447_v51  ;;  %v498_v0 = vmul.f32 %v493_v15, %v449_v60 }
 0x41f   :  { %v502_v20 = vpop.permute.xlu0 %501 }
 0x420   :  { %v504_v54 = vadd.f32 %v502_v20, %v495_v48  ;;  %v505_v1 = vadd.f32 %v502_v20, %v496_v23  ;;  %v506_v56 = vadd.f32 %v502_v20, %v497_v16  ;;  %v507_v29 = vadd.f32 %v502_v20, %v498_v0 }
 0x422   :  { %v1562_v43 = vmax.f32 %v504_v54, 0.0  ;;  %v1564_v37 = vmax.f32 %v507_v29, 0.0  ;;  %v1566_v59 = vmax.f32 %v505_v1, 0.0  ;;  %v1568_v34 = vmax.f32 %v506_v56, 0.0 }
 0x424   :  { %539 = vrot.lane.b32.xlu0 %v1562_v43, %s1166_s16  ;;  %v1096_v45 = vpack.i.bf16 %v1562_v43, %v1564_v37  ;;  %v1101_v42 = vpack.i.bf16 %v1568_v34, %v1566_v59  ;;  %v1106_v51 = vpack.i.bf16 %v1566_v59, %v1562_v43 }
 0x426   :  { %1097 = vrot.lane.b32.xlu1 %v1096_v45, %s1167_s17 }
 0x428   :  { %543 = vrot.lane.b32.xlu0 %v1568_v34, %s1166_s16 }
 0x42a   :  { %1102 = vrot.lane.b32.xlu1 %v1101_v42, %s1167_s17 }
 0x42c   :  { %1107 = vrot.lane.b32.xlu0 %v1106_v51, %s1169_s19 }
 0x42e   :  { %541 = vrot.lane.b32.xlu1 %v1566_v59, %s1166_s16 }
 0x432   :  { %545 = vrot.lane.b32.xlu1 %v1564_v37, %s1166_s16 }
 0x436   :  { %1112 = vrot.lane.b32.xlu1 %v1101_v42, %s1168_s18 }
 0x496   :  { %v540_v6 = vpop.permute.xlu0 %539 }
 0x498   :  { %v1098_v38 = vpop.permute.xlu1 %1097 }
 0x499   :  { %v1100_v60 = vunpack.i.h.bf16 %v1098_v38  ;;  %v1099_v52 = vunpack.i.l.bf16 %v1098_v38 }
 0x49a   :  { %v544_v61 = vpop.permute.xlu0 %543 }
 0x49b   :  { %v534_v30 = vsel %vm1894_vm0, %v1099_v52, %v1100_v60  ;;  %vm1898_vm0 = vmmov %vm1897_vm14 }
 0x49c   :  { %v1592_v57 = vsel %vm1241_vm1, %v1562_v43, %v534_v30  ;;  %v1103_v62 = vpop.permute.xlu1 %1102  ;;  %vm1899_vm1 = vmmov %vm1898_vm0 }
 0x49d   :  { %v1105_v9 = vunpack.i.h.bf16 %v1103_v62  ;;  %v1104_v58 = vunpack.i.l.bf16 %v1103_v62  ;;  %v1116_v41 = vpack.i.bf16 %v1592_v57, %v1564_v37  ;;  %v706_v16 = vrot.slane %v1592_v57, 4 }
 0x49e   :  { %v1108_v50 = vpop.permute.xlu0 %1107 }
 0x49f   :  { %v527_v53 = vsel %vm1895_vm15, %v1100_v60, %v1104_v58  ;;  %v529_v55 = vsel %vm1896_vm11, %v1105_v9, %v1099_v52  ;;  %1117 = vrot.lane.b32.xlu1 %v1116_v41, %s1169_s19  ;;  %v1110_v47 = vunpack.i.h.bf16 %v1108_v50  ;;  %v1109_v44 = vunpack.i.l.bf16 %v1108_v50 }
 0x4a0   :  { %v542_v25 = vpop.permute.xlu1 %541  ;;  %v1604_v11 = vsel %vm1259_vm4, %v1566_v59, %v527_v53  ;;  %v1609_v12 = vsel %vm1266_vm5, %v1564_v37, %v529_v55  ;;  %vm1900_vm4 = vmmov %vm1898_vm0  ;;  %vm1902_vm5 = vcmask 130048  }
 0x4a1   :  { %v547_v19 = vsel %vm1897_vm14, %v540_v6, %v542_v25  ;;  %v548_v18 = vsel %vm1898_vm0, %v542_v25, %v544_v61  ;;  %v1141_v39 = vpack.i.bf16 %v1604_v11, %v1562_v43  ;;  %v1151_v49 = vpack.i.bf16 %v1609_v12, %v1564_v37  ;;  %vm1907_vm15 = vmmov %vm1902_vm5 }
 0x4a2   :  { %v1614_v40 = vsel %vm1247_vm3, %v1562_v43, %v547_v19  ;;  %v1619_v63 = vsel %vm1278_vm7, %v1566_v59, %v548_v18  ;;  %vm1901_vm3 = vmmov %vm1896_vm11  ;;  %v594_v33 = vsel %vm1902_vm5, %v1109_v44, %v1110_v47  ;;  %v707_v56 = vrot.slane %v1604_v11, 4 }
 0x4a3   :  { %v1121_v26 = vpack.i.bf16 %v1614_v40, %v1604_v11  ;;  %v1126_v4 = vpack.i.bf16 %v1609_v12, %v1619_v63  ;;  %v528_v36 = vsel %vm1901_vm3, %v1104_v58, %v1105_v9  ;;  %v714_v48 = vrot.slane %v1614_v40, 4  ;;  %vm1904_vm7 = vmmov %vm1902_vm5 }
 0x4a4   :  { %v546_v7 = vpop.permute.xlu1 %545  ;;  %v1649_v32 = vsel %vm1320_vm9, %v1568_v34, %v528_v36  ;;  %v715_v0 = vrot.slane %v1619_v63, 4  ;;  %v709_v38 = vrot.slane %v1609_v12, 4  ;;  %vm1906_vm9 = vmmov %vm1902_vm5 }
 0x4a5   :  { %v549_v31 = vsel %vm1899_vm1, %v544_v61, %v546_v7  ;;  %v555_v35 = vsel %vm1900_vm4, %v546_v7, %v540_v6  ;;  %1122 = vrot.lane.b32.xlu0 %v1121_v26, %s1169_s19  ;;  %1127 = vrot.lane.b32.xlu1 %v1126_v4, %s1169_s19  ;;  %v1146_v46 = vpack.i.bf16 %v1592_v57, %v1649_v32  ;;  %v708_v58 = vrot.slane %v1649_v32, 4  ;;  %vm1908_vm11 = vmmov %vm1902_vm5 }
 0x4a6   :  { %v1632_v21 = vsel %vm1270_vm6, %v1564_v37, %v555_v35  ;;  %v1642_v22 = vsel %vm1311_vm8, %v1568_v34, %v549_v31  ;;  %vm1903_vm6 = vcmp.eq.s32.totalorder %v1366_v5, 0  ;;  %v1687_v41 = vsel %vm277_vm12, %v1566_v59, %v715_v0 }
 0x4a7   :  { %v1131_v8 = vpack.i.bf16 %v1632_v21, %v1568_v34  ;;  %v1136_v27 = vpack.i.bf16 %v1642_v22, %v1649_v32  ;;  %v603_v15 = vsel %vm1903_vm6, %v1566_v59, %v594_v33  ;;  %v716_v29 = vrot.slane %v1642_v22, 4  ;;  %vm1909_vm14 = vmmov %vm1903_vm6 }
 0x4a8   :  { %v1668_v24 = vpop.permute.xlu1 %1112  ;;  %v699_v20 = vrot.slane %v603_v15, 4  ;;  %v717_v60 = vrot.slane %v1632_v21, 4  ;;  %v1691_v53 = vsel %vm277_vm12, %v1562_v43, %v714_v48  ;;  %vm1905_vm8 = vcmask 916480   ;;  %vm1910_vm0 = vmmov %vm1903_vm6 }
 0x4a9   :  { %1132 = vrot.lane.b32.xlu0 %v1131_v8, %s1169_s19  ;;  %1142 = vrot.lane.b32.xlu1 %v1141_v39, %s1168_s18  ;;  %v1115_v54 = vunpack.i.h.bf16 %v1668_v24  ;;  %v1114_v1 = vunpack.i.l.bf16 %v1668_v24  ;;  %v1709_v35 = vsel %vm277_vm12, %v1568_v34, %v716_v29  ;;  %vm1911_vm1 = vcmp.eq.s32.totalorder %v1370_v10, 0  ;;  %vm1914_vm6 = vmmov %vm1902_vm5 }
 0x4aa   :  { %v1705_v31 = vsel %vm277_vm12, %v1564_v37, %v717_v60  ;;  %vm1912_vm4 = vcmp.eq.s32.totalorder %v1366_v5, 15  ;;  %vm1913_vm3 = vmmov %vm1911_vm1 }
 0x4ab   :  { %v661_v55 = vsel %vm1905_vm8, %v1114_v1, %v1115_v54 }
 0x4ad   :  { %1137 = vrot.lane.b32.xlu0 %v1136_v27, %s1169_s19  ;;  %1152 = vrot.lane.b32.xlu1 %v1151_v49, %s1168_s18  ;;  %v1717_v49 = vsel %vm1912_vm4, %v1566_v59, %v661_v55  ;;  %vm1922_vm4 = vmmov %vm1905_vm8 }
 0x4b1   :  { %1147 = vrot.lane.b32.xlu0 %v1146_v46, %s1168_s18  ;;  %677 = vrot.lane.b32.xlu1 %v1642_v22, %s1168_s18 }
 0x4b5   :  { %675 = vrot.lane.b32.xlu0 %v1619_v63, %s1168_s18  ;;  %679 = vrot.lane.b32.xlu1 %v1632_v21, %s1168_s18 }
 0x4b9   :  { %673 = vrot.lane.b32.xlu0 %v1614_v40, %s1168_s18 }
 0x511   :  { %v1118_v17 = vpop.permute.xlu1 %1117 }
 0x512   :  { %v1119_v23 = vunpack.i.l.bf16 %v1118_v17  ;;  %v1120_v45 = vunpack.i.h.bf16 %v1118_v17 }
 0x514   :  { %v601_v9 = vsel %vm1904_vm7, %v1119_v23, %v1109_v44  ;;  %vm1915_vm7 = vmmov %vm1902_vm5 }
 0x515   :  { %v602_v36 = vsel %vm1911_vm1, %v1562_v43, %v601_v9 }
 0x516   :  { %v698_v48 = vrot.slane %v602_v36, 4 }
 0x517   :  { %v1123_v42 = vpop.permute.xlu0 %1122  ;;  %v1128_v51 = vpop.permute.xlu1 %1127 }
 0x518   :  { %v1125_v52 = vunpack.i.h.bf16 %v1123_v42  ;;  %v1124_v6 = vunpack.i.l.bf16 %v1123_v42  ;;  %v1130_v30 = vunpack.i.h.bf16 %v1128_v51  ;;  %v1129_v62 = vunpack.i.l.bf16 %v1128_v51 }
 0x51a   :  { %v573_v61 = vsel %vm1906_vm9, %v1120_v45, %v1124_v6  ;;  %v580_v25 = vsel %vm1907_vm15, %v1130_v30, %v1120_v45  ;;  %v619_v19 = vsel %vm1908_vm11, %v1125_v52, %v1129_v62  ;;  %vm1916_vm9 = vcmp.eq.s32.totalorder %v1374_v14, 0  ;;  %vm1918_vm11 = vmmov %vm1911_vm1 }
 0x51b   :  { %v1133_v18 = vpop.permute.xlu0 %1132  ;;  %v1143_v26 = vpop.permute.xlu1 %1142  ;;  %v582_v4 = vsel %vm1909_vm14, %v1604_v11, %v573_v61  ;;  %v628_v7 = vsel %vm1910_vm0, %v1619_v63, %v619_v19  ;;  %v581_v46 = vsel %vm1913_vm3, %v1592_v57, %v580_v25  ;;  %vm1917_vm15 = vcmp.eq.s32.totalorder %v1372_v13, 0  ;;  %vm1919_vm14 = vmmov %vm1902_vm5 }
 0x51c   :  { %v1135_v8 = vunpack.i.h.bf16 %v1133_v18  ;;  %v1134_v39 = vunpack.i.l.bf16 %v1133_v18  ;;  %v1144_v27 = vunpack.i.l.bf16 %v1143_v26  ;;  %v735_v50 = vsel %vm277_vm12, %v582_v4, %v699_v20  ;;  %vm1920_vm0 = vmmov %vm1902_vm5 }
 0x51d   :  { %v739_v44 = vsel %vm277_vm12, %v628_v7, %v707_v56  ;;  %v1145_v29 = vunpack.i.h.bf16 %v1143_v26  ;;  %vm1921_vm1 = vmmov %vm1920_vm0 }
 0x51e   :  { %v595_v24 = vsel %vm1902_vm5, %v1110_v47, %v1134_v39  ;;  %v596_v33 = vsel %vm1914_vm6, %v1134_v39, %v1119_v23  ;;  %v626_v17 = vsel %vm1915_vm7, %v1135_v8, %v1125_v52  ;;  %v660_v15 = vsel %vm1905_vm8, %v1144_v27, %v1114_v1  ;;  %vm1923_vm3 = vmmov %vm1920_vm0 }
 0x51f   :  { %v604_v59 = vsel %vm1916_vm9, %v1568_v34, %v595_v24  ;;  %v605_v0 = vsel %vm1917_vm15, %v1564_v37, %v596_v33  ;;  %v627_v20 = vsel %vm1918_vm11, %v1614_v40, %v626_v17  ;;  %v1138_v47 = vpop.permute.xlu0 %1137  ;;  %v1153_v56 = vpop.permute.xlu1 %1152  ;;  %v727_v23 = vrot.slane %v1717_v49, 4  ;;  %vm1924_vm5 = vmmov %vm1922_vm4 }
 0x520   :  { %v669_v1 = vsel %vm46_vm2, %v1562_v43, %v660_v15  ;;  %v1140_v45 = vunpack.i.h.bf16 %v1138_v47  ;;  %v1139_v42 = vunpack.i.l.bf16 %v1138_v47  ;;  %v1154_v51 = vunpack.i.l.bf16 %v1153_v56  ;;  %vm1925_vm6 = vmmov %vm1916_vm9 }
 0x521   :  { %v1009_v60 = vpack.c.bf16 %v739_v44, %v735_v50  ;;  %v734_v52 = vsel %vm277_vm12, %v581_v46, %v698_v48  ;;  %v700_v9 = vrot.slane %v604_v59, 4  ;;  %v701_v55 = vrot.slane %v605_v0, 4  ;;  %vm1927_vm8 = vmmov %vm1925_vm6 }
 0x522   :  { %v620_v61 = vsel %vm1919_vm14, %v1129_v62, %v1140_v45  ;;  %v738_v25 = vsel %vm277_vm12, %v627_v20, %v706_v16  ;;  %v726_v19 = vrot.slane %v669_v1, 4  ;;  %v574_v18 = vsel %vm1920_vm0, %v1124_v6, %v1139_v42  ;;  %vm1928_vm9 = vmmov %vm1922_vm4 }
 0x523   :  { %v575_v26 = vsel %vm1921_vm1, %v1139_v42, %v1130_v30  ;;  %v662_v4 = vsel %vm1922_vm4, %v1115_v54, %v1154_v51  ;;  %1010 = vmatprep.subr.bf16.mxu0 %v1009_v60  ;;  %v1148_v43 = vpop.permute.xlu0 %1147  ;;  %v621_v7 = vsel %vm1923_vm3, %v1140_v45, %v1135_v8  ;;  %v1155_v36 = vunpack.i.h.bf16 %v1153_v56  ;;  %v678_v30 = vpop.permute.xlu1 %677  ;;  %vm1929_vm11 = vmmov %vm1922_vm4 }
 0x524   :  { %v668_v39 = vsel %vm1924_vm5, %v1154_v51, %v1144_v27  ;;  %v1150_v49 = vunpack.i.h.bf16 %v1148_v43  ;;  %v629_v62 = vsel %vm1925_vm6, %v1642_v22, %v620_v61  ;;  %vm1926_vm7 = vcmp.eq.s32.totalorder %v1374_v14, 15  ;;  %vm1930_vm14 = vmmov %vm1922_vm4 }
 0x525   :  { %v671_v16 = vsel %vm1926_vm7, %v1568_v34, %v662_v4  ;;  %v1149_v6 = vunpack.i.l.bf16 %v1148_v43  ;;  %v1011_v46 = vpack.c.bf16 %v738_v25, %v734_v52  ;;  %v583_v54 = vsel %vm1927_vm8, %v1649_v32, %v574_v18  ;;  %vm1931_vm0 = vmmov %vm1922_vm4 }
 0x526   :  { %v672_v8 = vsel %vm49_vm13, %v1564_v37, %v668_v39  ;;  %v639_v27 = vsel %vm1928_vm9, %v1150_v49, %v1145_v29  ;;  %v584_v50 = vsel %vm1917_vm15, %v1609_v12, %v575_v26  ;;  %v647_v24 = vsel %vm1931_vm0, %v1155_v36, %v1150_v49  ;;  %vm1932_vm1 = vmmov %vm1917_vm15 }
 0x527   :  { %v640_v44 = vsel %vm1929_vm11, %v1145_v29, %v1149_v6  ;;  %v641_v34 = vsel %vm1930_vm14, %v1149_v6, %v1155_v36  ;;  %1012 = vmatpush1.bf16.msra.mxu0 %v1011_v46  ;;  %v676_v33 = vpop.permute.xlu0 %675  ;;  %v630_v17 = vsel %vm1932_vm1, %v1632_v21, %v621_v7  ;;  %v728_v15 = vrot.slane %v671_v16, 4  ;;  %vm1933_vm4 = vmmov %vm1926_vm7  ;;  %v680_v42 = vpop.permute.xlu1 %679 }
 0x528   :  { %v648_v37 = vsel %vm46_vm2, %v1592_v57, %v639_v27  ;;  %v650_v48 = vsel %vm1933_vm4, %v1649_v32, %v641_v34  ;;  %v737_v59 = vsel %vm277_vm12, %v584_v50, %v701_v55  ;;  %v729_v0 = vrot.slane %v672_v8, 4  ;;  %vm1935_vm5 = vmmov %vm1931_vm0 }
 0x529   :  { %v741_v20 = vsel %vm277_vm12, %v630_v17, %v709_v38  ;;  %v736_v47 = vsel %vm277_vm12, %v583_v54, %v700_v9  ;;  %v740_v56 = vsel %vm277_vm12, %v629_v62, %v708_v58  ;;  %vm1934_vm3 = vcmp.eq.s32.totalorder %v1366_v5, 15  ;;  %vm1936_vm6 = vmmov %vm1931_vm0 }
 0x52a   :  { %v1017_v29 = vpack.c.bf16 %v741_v20, %v737_v59  ;;  %v1019_v1 = vpack.c.bf16 %v740_v56, %v736_v47  ;;  %v649_v57 = vsel %vm1934_vm3, %v1604_v11, %v640_v44  ;;  %v651_v45 = vsel %vm49_vm13, %v1609_v12, %v647_v24  ;;  %vm1937_vm7 = vmmov %vm1931_vm0 }
 0x52b   :  { %v674_v51 = vpop.permute.xlu0 %673  ;;  %v747_v38 = vsel %vm277_vm12, %v649_v57, %v727_v23  ;;  %v749_v60 = vsel %vm277_vm12, %v651_v45, %v729_v0  ;;  %v746_v32 = vsel %vm277_vm12, %v648_v37, %v726_v19  ;;  %v748_v58 = vsel %vm277_vm12, %v650_v48, %v728_v15  ;;  %vm1938_vm8 = vmmov %vm1934_vm3 }
 0x52c   :  { %v682_v52 = vsel %vm1935_vm5, %v676_v33, %v678_v30  ;;  %1018 = vmatprep.subr.bf16.mxu1 %v1017_v29  ;;  %v689_v9 = vsel %vm1936_vm6, %v680_v42, %v674_v51  ;;  %v1013_v11 = vpack.c.bf16 %v747_v38, %v1687_v41  ;;  %v1021_v55 = vpack.c.bf16 %v749_v60, %v1705_v31  ;;  %vm1939_vm9 = vmmov %vm1931_vm0 }
 0x52d   :  { %1020 = vmatpush1.bf16.msra.mxu1 %v1019_v1  ;;  %v1015_v12 = vpack.c.bf16 %v746_v32, %v1691_v53  ;;  %v1023_v23 = vpack.c.bf16 %v748_v58, %v1709_v35  ;;  %v681_v61 = vsel %vm1937_vm7, %v674_v51, %v676_v33  ;;  %v691_v25 = vsel %vm1938_vm8, %v1619_v63, %v682_v52  ;;  %v986_v53 = vld [vmem:[%s1850_s1 + $0x4] sm:$0xf] }
 0x52e   :  { %1014 = vmatprep.subr.bf16.mxu0 %v1013_v11  ;;  %1022 = vmatprep.subr.bf16.mxu1 %v1021_v55  ;;  %v693_v41 = vsel %vm49_vm13, %v1632_v21, %v689_v9  ;;  %v683_v31 = vsel %vm1939_vm9, %v678_v30, %v680_v42  ;;  %v690_v35 = vsel %vm46_vm2, %v1614_v40, %v681_v61  ;;  %vm1940_vm13 = vmmov %vm1933_vm4  ;;  %v1173_v33 = vmov 2   ;;  %v1164_v52 = vld [vmem:[%s1849_s0] sm:$0xff] }
 0x52f   :  { %1016 = vmatpush1.bf16.msra.mxu0 %v1015_v12  ;;  %v692_v5 = vsel %vm1940_vm13, %v1642_v22, %v683_v31  ;;  %1156 = vset.pattern.permute.xlu1 %v1173_v33  ;;  %v1174_v48 = vmov 3  }
 0x530   :  { %987 = vmatprep.subr.msk.mxu0 %vm277_vm12, %v691_v25  ;;  %1157 = vset.pattern.permute.xlu0 %v1174_v48 }
 0x531   :  { %1024 = vmatpush1.bf16.msra.mxu1 %v1023_v23 }
 0x532   :  { %990 = vmatprep.subr.msk.mxu1 %vm277_vm12, %v693_v41 }
 0x533   :  { %988 = vmatpush1.msk.msra.mxu0 %vm277_vm12, %v690_v35 }
 0x534   :  { %989 = vmatmul.mubr.msk.f32.vlgmr.msra.gmra.mrb[2].mxu0 %vm294_vm10, %v986_v53 }
 0x535   :  { %991 = vmatpush1.msk.msra.mxu1 %vm277_vm12, %v692_v5 }
 0x536   :  { %992 = vmatmul.mubr.msk.f32.vlgmr.msra.gmra.mrb[2].mxu1 %vm294_vm10, %v986_v53 }
 0x607   :  { %v831_v13 = vpop.f32.mrb[2].mxu0 }
 0x608   :  { %v907_v63 = vsel %vm277_vm12, %v831_v13, 0.0  ;;  %v833_v21 = vpop.f32.mrb[3].mxu0 }
 0x609   :  { %v908_v10 = vsel %vm277_vm12, %v833_v21, 0.0  ;;  %v902_v40 = vpop.f32.mrb[2].mxu1 }
 0x60a   :  { %v909_v19 = vadd.f32 %v908_v10, %v907_v63  ;;  %v910_v18 = vsel %vm277_vm12, %v902_v40, 0.0  ;;  %v904_v26 = vpop.f32.mrb[3].mxu1 }
 0x60b   :  { %v912_v14 = vsel %vm277_vm12, %v904_v26, 0.0 }
 0x60c   :  { %v911_v4 = vadd.f32 %v910_v18, %v909_v19 }
 0x60e   :  { %v913_v22 = vadd.f32 %v912_v14, %v911_v4 }
 0x610   :  { %914 = vadd.xlane.f32.xlu0 %v913_v22 }
 0x69d   :  { %v915_v43 = vpop.xlane.xlu0 %914 }
 0x69e   :  { %v916_v7 = vmul.f32 0.001953125, %v915_v43 }
 0x6a0   :  { %v917_v36 = vsub.f32 %v831_v13, %v916_v7  ;;  %v918_v39 = vsub.f32 %v833_v21, %v916_v7  ;;  %v919_v49 = vsub.f32 %v902_v40, %v916_v7  ;;  %v920_v62 = vsub.f32 %v904_v26, %v916_v7 }
 0x6a2   :  { %v921_v16 = vmul.f32 %v917_v36, %v917_v36  ;;  %v922_v6 = vmul.f32 %v918_v39, %v918_v39  ;;  %v923_v30 = vmul.f32 %v919_v49, %v919_v49  ;;  %v924_v46 = vmul.f32 %v920_v62, %v920_v62 }
 0x6a4   :  { %v925_v54 = vsel %vm277_vm12, %v921_v16, 0.0  ;;  %v926_v8 = vsel %vm277_vm12, %v922_v6, 0.0  ;;  %v928_v50 = vsel %vm277_vm12, %v923_v30, 0.0  ;;  %v930_v34 = vsel %vm277_vm12, %v924_v46, 0.0 }
 0x6a5   :  { %v927_v27 = vadd.f32 %v926_v8, %v925_v54 }
 0x6a7   :  { %v929_v44 = vadd.f32 %v928_v50, %v927_v27 }
 0x6a9   :  { %v931_v24 = vadd.f32 %v930_v34, %v929_v44 }
 0x6ab   :  { %932 = vadd.xlane.f32.xlu1 %v931_v24 }
 0x738   :  { %v933_v17 = vpop.xlane.xlu1 %932 }
 0x739   :  { %v934_v15 = vmul.f32 0.001953125, %v933_v17 }
 0x73b   :  { %v935_v37 = vadd.f32 1e-05, %v934_v15 }
 0x73d   :  { %1162 = vrsqrt.f32 %v935_v37 }
 0x747   :  { %v1163_v59 = vpop.eup %1162 }
 0x748   :  { %v937_v0 = vmul.f32 %v1163_v59, %v1557_v28 }
 0x74a   :  { %946 = vperm.xlu1 %1156, %v937_v0   ;;  %v938_v20 = vmul.f32 %v937_v0, %v916_v7 }
 0x74c   :  { %940 = vrot.lane.b32.xlu0 %v938_v20, %s1167_s17 }
 0x7be   :  { %v941_v47 = vpop.permute.xlu0 %940 }
 0x7bf   :  { %v943_v56 = vsub.f32 %v1557_v28, %v941_v47  ;;  %v1165_v28 = vld [vmem:[%s1849_s0 + $0x8] sm:$0xff] }
 0x7c1   :  { %955 = vperm.xlu0 %1157, %v943_v56  }
 0x7c9   :  { %v947_v29 = vpop.permute.xlu1 %946 }
 0x7ca   :  { %v949_v1 = vmul.f32 %v947_v29, %v831_v13  ;;  %v950_v57 = vmul.f32 %v947_v29, %v833_v21  ;;  %v951_v45 = vmul.f32 %v947_v29, %v902_v40  ;;  %v952_v42 = vmul.f32 %v947_v29, %v904_v26 }
 0x840   :  { %v956_v51 = vpop.permute.xlu0 %955 }
 0x841   :  { %v958_v38 = vadd.f32 %v956_v51, %v949_v1  ;;  %v959_v60 = vadd.f32 %v956_v51, %v950_v57  ;;  %v960_v32 = vadd.f32 %v956_v51, %v951_v45  ;;  %v961_v58 = vadd.f32 %v956_v51, %v952_v42 }
 0x843   :  { %v962_v9 = vadd.f32 %v1164_v52, %v958_v38  ;;  %v963_v11 = vadd.f32 %v959_v60, %v1213_v3  ;;  %v964_v55 = vadd.f32 %v1165_v28, %v960_v32  ;;  %v965_v12 = vadd.f32 %v961_v58, %v1209_v2 }
 0x845   :  { %v970_v23 = vcombine.low %v962_v9, %v963_v11  ;;  %v971_v61 = vcombine.low %v964_v55, %v965_v12 }
 0x847   :  { %974 = vst [vmem:[%s1852_s3] sm:$0xff] %v970_v23  ;;  %975 = vst [vmem:[%s1852_s3 + $0x8] sm:$0xff] %v971_v61 }

</bundles_post_ra>
